<compile_context>
chip_gen: v7x
topology: tpu7x:2x2x1
jax: 0.10.0
libtpu: 0.0.40
codegen_flags: <defaults>
</compile_context>

<pallas_src>
import math

import jax
import jax.numpy as jnp
from jax.experimental import pallas as pl
from jax.experimental.pallas import tpu as pltpu


def _frqi_kernel(x_ref, s_ref, out_ref):
    """FRQI hot path (one grid step = R lane-dense rows of G*P pixels each).

    x_ref:   (R, G*P) raw pixel values in [0, 255], any real/integer dtype
    s_ref:   (G*P, G) constant segment-mean matrix: s[j, k] = 1/P if j//P == k else 0
    out_ref: (R, G)   per-batch-item <Z_color> = mean_i cos(pixel_i * pi / 255)
    """
    # Cast AFTER the (narrow) HBM->VMEM load so uint8 inputs only move 1 byte/pixel.
    x = x_ref[...].astype(jnp.float32)

    # 2*theta = pixel/255 * pi  ->  one EUP transcendental per element.
    c2 = jnp.cos(x * (math.pi / 255.0))

    # Per-batch-item mean over its P consecutive lanes via a one-hot segment-mean
    # matmul on the otherwise idle MXU.  HIGHEST precision keeps f32 exact (default
    # precision would truncate the cos values to bf16 and break the 1e-5 budget).
    out_ref[...] = jnp.dot(
        c2,
        s_ref[...],
        preferred_element_type=jnp.float32,
        precision=jax.lax.Precision.HIGHEST,
    )


def _pick_group(b: int):
    """Choose G = batch items per lane-row (lane extent is G*P) and the padded batch.

    G = 128 gives a lane-dense output (last dim exactly 128) whenever B allows.
    Small / awkward batches fall back to a single full-extent row group (always a
    legal block shape); large awkward batches are padded with fake items that are
    sliced off after the kernel.
    """
    if b % 128 == 0:
        return 128, b
    if b <= 512:
        return b, b
    b_pad = ((b + 127) // 128) * 128
    return 128, b_pad


def _pick_rows_per_step(rows_total: int, bytes_per_row: int) -> int:
    """Rows per grid step.

    Targets <= ~4 MiB of (input + output) blocks per step — double-buffered this
    stays well inside v5e's 16 MiB default scoped VMEM and v7x's 64 MiB physical
    VMEM — keeps the sublane extent a multiple of 32 (legal for uint8/bf16/f32
    when the block is not the full extent), and prefers >= 2 grid steps so the
    "parallel" batch axis can shard across v7x's two TensorCores.
    """
    if rows_total <= 1:
        return max(rows_total, 1)
    budget = 4 << 20
    max_rows = max(1, budget // max(bytes_per_row, 1))

    # Prefer a split (>= 2 steps) whose tile is a multiple of 32 rows.
    upper = min(rows_total // 2, max_rows)
    for r in range(upper, 31, -1):
        if rows_total % r == 0 and r % 32 == 0:
            return r

    # No such split: one full-extent step if it fits the budget (always legal).
    if rows_total <= max_rows:
        return rows_total

    # Otherwise the largest 32-row-multiple divisor under budget.
    for r in range(min(rows_total - 1, max_rows), 0, -1):
        if rows_total % r == 0 and r % 32 == 0:
            return r
    return rows_total  # oversize fallback; still correct


def frqi_encoding(inputs, qubits: int = 3):
    """Pallas implementation of FRQI_Encoding.forward.

    inputs:  (B, H, W) pixel values in [0, 255] (uint8 or float — passed through as-is)
    returns: (B, qubits) float32 — stacked version of the torch module's list output.
    """
    b, h, w = inputs.shape
    p = h * w
    assert p == 2 ** (qubits - 1), "input_pixels must equal 2**(qubits-1)"

    g, b_pad = _pick_group(b)
    rows = b_pad // g
    if rows < 8:
        # Pad the sublane extent up to a full (8, 128)-tile worth of rows so the MXU
        # matmul operands are never degenerate.  Fake items are sliced off below.
        rows = 8
        b_pad = rows * g
    lanes = g * p

    # Metadata-only reshape of the contiguous batch-major / pixel-minor buffer.
    flat = inputs.reshape(b * p)
    if b_pad != b:
        flat = jnp.pad(flat, (0, (b_pad - b) * p))  # whole fake batch items (zeros)
    x2d = flat.reshape(rows, lanes)

    # Constant segment-mean matrix: column k sums (scaled by 1/P) the P consecutive
    # lanes of batch item k within a row.  Built once per call, kept resident in the
    # kernel via a constant-index BlockSpec (the MXU is otherwise idle here).
    seg = (jnp.arange(lanes, dtype=jnp.int32) // p)[:, None] == jnp.arange(
        g, dtype=jnp.int32
    )[None, :]
    s_mat = seg.astype(jnp.float32) * (1.0 / float(p))

    itemsize = x2d.dtype.itemsize
    r_tile = _pick_rows_per_step(rows, lanes * itemsize + g * 4)
    grid = (rows // r_tile,)

    cost = pl.CostEstimate(
        flops=2 * b_pad * p + 2 * rows * lanes * g,  # scale + segment-mean matmul
        transcendentals=b_pad * p,                   # one cos per pixel
        bytes_accessed=b_pad * p * itemsize + lanes * g * 4 + rows * g * 4,
    )

    means2d = pl.pallas_call(
        _frqi_kernel,
        out_shape=jax.ShapeDtypeStruct((rows, g), jnp.float32),
        grid=grid,
        in_specs=[
            pl.BlockSpec((r_tile, lanes), lambda i: (i, 0)),
            pl.BlockSpec((lanes, g), lambda i: (0, 0)),  # constant block, stays resident
        ],
        out_specs=pl.BlockSpec((r_tile, g), lambda i: (i, 0)),
        compiler_params=pltpu.CompilerParams(
            dimension_semantics=("parallel",),  # batch tiles shard across v7x's 2 TCs
        ),
        cost_estimate=cost,
    )(x2d, s_mat)

    means = means2d.reshape(b_pad)[:b]  # drop padded fake batch items

    # Assemble (B, qubits): position wires are exactly 0 for this circuit; only the
    # colour wire carries signal.  Done in the wrapper so the kernel output stays
    # lane-dense (no masked narrow stores, no per-tile iota/where).
    return jnp.zeros((b, qubits), jnp.float32).at[:, -1].set(means)


if __name__ == "__main__":
    key = jax.random.PRNGKey(0)

    def reference(pix, nq):
        bb = pix.shape[0]
        xf = pix.reshape(bb, -1).astype(jnp.float32)
        color = jnp.mean(jnp.cos(xf * (math.pi / 255.0)), axis=1)
        return jnp.concatenate(
            [jnp.zeros((bb, nq - 1), jnp.float32), color[:, None]], axis=1
        )

    # --- Test 1: module defaults (qubits=3, input_pixels=4), tiny uint8 batch ---------
    qubits1 = 3
    B1, H1, W1 = 2, 2, 2  # H*W = 4 = 2**(qubits-1)
    pix1 = jax.random.randint(key, (B1, H1, W1), 0, 256, dtype=jnp.int32).astype(
        jnp.uint8
    )
    out1 = jax.block_until_ready(frqi_encoding(pix1, qubits=qubits1))
    ref1 = reference(pix1, qubits1)
    assert out1.shape == (B1, qubits1)
    assert jnp.allclose(out1, ref1, atol=1e-5), (out1, ref1)

    # --- Test 2: float32 pixels, qubits=5, B not a multiple of 128 ---------------------
    qubits2 = 5
    B2, H2, W2 = 96, 4, 4  # H*W = 16 = 2**(qubits2-1)
    key2 = jax.random.fold_in(key, 1)
    pix2 = jax.random.uniform(
        key2, (B2, H2, W2), minval=0.0, maxval=255.0, dtype=jnp.float32
    )
    out2 = jax.block_until_ready(frqi_encoding(pix2, qubits=qubits2))
    ref2 = reference(pix2, qubits2)
    assert out2.shape == (B2, qubits2)
    assert jnp.allclose(out2, ref2, atol=1e-5), (out2, ref2)

    # --- Test 3: larger awkward batch (> 512, not multiple of 128) -> G=128 + padding --
    qubits3 = 3
    B3 = 600
    key3 = jax.random.fold_in(key, 2)
    pix3 = jax.random.randint(key3, (B3, 2, 2), 0, 256, dtype=jnp.int32).astype(
        jnp.uint8
    )
    out3 = jax.block_until_ready(frqi_encoding(pix3, qubits=qubits3))
    ref3 = reference(pix3, qubits3)
    assert out3.shape == (B3, qubits3)
    assert jnp.allclose(out3, ref3, atol=1e-5), (out3, ref3)

    print("KERNEL_OK")
</pallas_src>

<mosaic_0001>
module attributes {stable_mosaic.version = 11 : i64} {
  func.func @_frqi_kernel(%arg0: i32, %arg1: memref<8x8xi8, #tpu.memory_space<vmem>>, %arg2: memref<8x2xf32, #tpu.memory_space<vmem>>, %arg3: memref<8x2xf32, #tpu.memory_space<vmem>>) attributes {dimension_semantics = [#tpu.dimension_semantics<parallel>], iteration_bounds = array<i64: 1>, scalar_prefetch = 0 : i64, scratch_operands = 0 : i64, tpu.core_type = #tpu.core_type<tc>, window_params = [{transform_indices = @transform_0, window_bounds = array<i64: 8, 8>}, {pipeline_mode = #tpu.pipeline_mode<synchronous>, transform_indices = @transform_1, window_bounds = array<i64: 8, 2>}, {transform_indices = @transform_2, window_bounds = array<i64: 8, 2>}]} {
    %c0 = arith.constant 0 : index
    %c0_0 = arith.constant 0 : index
    %0 = vector.load %arg1[%c0, %c0_0] : memref<8x8xi8, #tpu.memory_space<vmem>>, vector<8x8xi8>
    %1 = arith.uitofp %0 : vector<8x8xi8> to vector<8x8xf32>
    %cst = arith.constant 0.0123199709 : f32
    %2 = vector.broadcast %cst : f32 to vector<8x8xf32>
    %3 = arith.mulf %1, %2 : vector<8x8xf32>
    %4 = math.cos %3 : vector<8x8xf32>
    %c0_1 = arith.constant 0 : index
    %c0_2 = arith.constant 0 : index
    %5 = vector.load %arg2[%c0_1, %c0_2] : memref<8x2xf32, #tpu.memory_space<vmem>>, vector<8x2xf32>
    %cst_3 = arith.constant dense<0.000000e+00> : vector<8x2xf32>
    %6 = tpu.matmul %4, %5, %cst_3 {dimension_numbers = #tpu.dot_dimension_numbers<[1], [0], [0], [1], [0, 0, 1, 1], [], []>, precision = #tpu.contract_precision<fp32>} : vector<8x8xf32>, vector<8x2xf32>, vector<8x2xf32> -> vector<8x2xf32>
    %c0_4 = arith.constant 0 : index
    %c0_5 = arith.constant 0 : index
    %7 = vector.load %arg3[%c0_4, %c0_5] : memref<8x2xf32, #tpu.memory_space<vmem>>, vector<8x2xf32>
    tpu.vector_store %arg3[%c0_4, %c0_5], %6 {strides = array<i32>} : memref<8x2xf32, #tpu.memory_space<vmem>>, vector<8x2xf32>,
    return
  }
  func.func @transform_0(%arg0: i32) -> (i32, i32) {
    %c0_i32 = arith.constant 0 : i32
    %c0_i32_0 = arith.constant 0 : i32
    return %arg0, %c0_i32 : i32, i32
  }
  func.func @transform_1(%arg0: i32) -> (i32, i32) {
    %c0_i32 = arith.constant 0 : i32
    %c0_i32_0 = arith.constant 0 : i32
    %c0_i32_1 = arith.constant 0 : i32
    return %c0_i32, %c0_i32_0 : i32, i32
  }
  func.func @transform_2(%arg0: i32) -> (i32, i32) {
    %c0_i32 = arith.constant 0 : i32
    %c0_i32_0 = arith.constant 0 : i32
    return %arg0, %c0_i32 : i32, i32
  }
}

</mosaic_0001>

<bundles_post_ra>
// kernel: tpu_custom_call.1
= control target key start
LH: loop header
LB: loop body
LE: loop exit
PB: predicated region body
PF: predicated region fallthrough
CT: control target
= control target key end

     0   :  { %v647_v0 = vmov 0.0   ;;  %vm648_vm0 = vmmov 0   ;;  %v649_v19 = vmov 683565275   ;;  %v650_v21 = vmov 2475754826   ;;  %s728_s1 = inlined_call_operand.vmem [shape: f32[8,2], index: 1, kind: input, shape index: {}]   ;;  %s729_s0 = inlined_call_operand.vmem [shape: u8[8,8], index: 0, kind: input, shape index: {}]   ;;  %s730_s2 = inlined_call_operand.vmem [shape: f32[8,2], index: 2, kind: output, shape index: {}]  }
   0x1   :  { %607 = vmatprep.subr.mxu0 %v647_v0  ;;  %v674_v1 = vld [vmem:[%s728_s1] sm:$0xff]  ;;  %609 = vmatprep.mubr.msk.f32.mxu0 %vm648_vm0, %v647_v0  ;;  %v651_v23 = vmov 2131351028   ;;  %v652_v25 = vmov 2102212464   ;;  %vm120_vm14 = vcmask 64512  }
   0x2   :  { %v11_v2 = vld [vmem:[%s729_s0] sm:$0x3]  ;;  %v682_v3 = vand.u32 4294901760, %v674_v1  ;;  %592 = vmatprep.subr.mxu1 %v647_v0  ;;  %594 = vmatprep.mubr.msk.f32.mxu1 %vm648_vm0, %v647_v0  ;;  %v653_v27 = vmov 920167782   ;;  %vm570_vm15 = vcmask 15360  }
   0x3   :  { %v12_v4 = vunpack.c.0.s8 %v11_v2  ;;  %v654_v34 = vmov 1326507024  }
   0x4   :  { %608 = vmatpush3.msra.mxu0 %v682_v3  ;;  %593 = vmatpush3.msra.mxu1 %v682_v3 }
   0x5   :  { %v13_v5 = vand.u32 255, %v12_v4  ;;  %597 = vmatprep.subr.mxu1 %v647_v0  ;;  %612 = vmatprep.subr.mxu0 %v647_v0 }
   0x7   :  { %v14_v6 = vcvt.s32.f32 %v13_v5 }
   0x9   :  { %v691_v7 = vmul.f32 0.012319971, %v14_v6 }
   0xb   :  { %v19_v8 = vand.u32 2139095040, %v691_v7  ;;  %v16_v10 = vand.u32 2147483647, %v691_v7  ;;  %vm18_vm8 = vcmp.lt.s32.totalorder %v691_v7, 0  ;;  %vm108_vm13 = vweird.f32 %v691_v7 }
   0xd   :  { %v20_v9 = vshrl.u32 %v19_v8, 23  ;;  %v23_v13 = vand.u32 8388607, %v16_v10  ;;  %vm17_vm9 = vcmp.le.f32.partialorder %v16_v10, 0.7853982  ;;  %v202_v10 = vsub.f32 %v674_v1, %v682_v3 }
   0xf   :  { %v576_v11 = vadd.s32 4294967169, %v20_v9  ;;  %v24_v16 = vor.u32 8388608, %v23_v13 }
  0x11   :  { %v26_v12 = vadd.s32 1, %v576_v11  ;;  %v64_v36 = vshll.u32 %v24_v16, 8 }
  0x13   :  { %vm27_vm1 = vcmp.gt.s32.totalorder %v26_v12, 0 }
  0x14   :  { %v28_v14 = vsel %vm27_vm1, %v26_v12, 0 }
  0x15   :  { %v30_v15 = vand.u32 31, %v28_v14  ;;  %v29_v17 = vshrl.u32 %v28_v14, 5 }
  0x17   :  { %v31_v18 = vsub.s32 32, %v30_v15  ;;  %v33_v20 = vshll.u32 %v649_v19, %v30_v15  ;;  %v36_v22 = vshll.u32 %v650_v21, %v30_v15  ;;  %v39_v24 = vshll.u32 %v651_v23, %v30_v15 }
  0x18   :  { %v42_v26 = vshll.u32 %v652_v25, %v30_v15  ;;  %v45_v28 = vshll.u32 %v653_v27, %v30_v15  ;;  %vm48_vm2 = vcmp.lt.s32.totalorder %v29_v17, 1  ;;  %vm51_vm3 = vcmp.lt.s32.totalorder %v29_v17, 4 }
  0x19   :  { %v32_v29 = vshrl.u32 %v649_v19, %v31_v18  ;;  %v34_v30 = vshrl.u32 %v650_v21, %v31_v18  ;;  %v37_v31 = vshrl.u32 %v651_v23, %v31_v18  ;;  %v40_v32 = vshrl.u32 %v652_v25, %v31_v18 }
  0x1a   :  { %v43_v33 = vshrl.u32 %v653_v27, %v31_v18  ;;  %v46_v35 = vshrl.u32 %v654_v34, %v31_v18  ;;  %vm49_vm4 = vcmp.lt.s32.totalorder %v29_v17, 2  ;;  %vm50_vm5 = vcmp.lt.s32.totalorder %v29_v17, 3 }
  0x1b   :  { %v35_v37 = vor.u32 %v34_v30, %v33_v20  ;;  %v38_v38 = vor.u32 %v37_v31, %v36_v22  ;;  %v41_v39 = vor.u32 %v40_v32, %v39_v24 }
  0x1c   :  { %v44_v40 = vor.u32 %v43_v33, %v42_v26  ;;  %v47_v41 = vor.u32 %v46_v35, %v45_v28 }
  0x1d   :  { %v52_v42 = vsel %vm48_vm2, %v32_v29, %v35_v37  ;;  %v53_v43 = vsel %vm51_vm3, %v41_v39, 2102212464  ;;  %v56_v44 = vsel %vm48_vm2, %v35_v37, %v38_v38  ;;  %v60_v45 = vsel %vm48_vm2, %v38_v38, %v41_v39 }
  0x1e   :  { %v54_v46 = vsel %vm50_vm5, %v38_v38, %v53_v43  ;;  %v57_v47 = vsel %vm51_vm3, %v44_v40, 920167782  ;;  %v61_v48 = vsel %vm51_vm3, %v47_v41, 1326507024 }
  0x1f   :  { %v58_v49 = vsel %vm50_vm5, %v41_v39, %v57_v47  ;;  %v62_v50 = vsel %vm50_vm5, %v44_v40, %v61_v48  ;;  %v55_v51 = vsel %vm49_vm4, %v52_v42, %v54_v46  ;;  %v203_v40 = vand.u32 4294901760, %v202_v10 }
  0x20   :  { %v59_v52 = vsel %vm49_vm4, %v56_v44, %v58_v49  ;;  %v63_v53 = vsel %vm49_vm4, %v60_v45, %v62_v50  ;;  %v71_v58 = vmul.u32 %v64_v36, %v55_v51 }
  0x21   :  { %v697_v54 = vmul.u32.u64.low %v64_v36, %v63_v53  ;;  %v698_v55 = vmul.u32.u64.high %v64_v36, %v63_v53, %v697_v54  ;;  %v700_v56 = vmul.u32.u64.low %v64_v36, %v59_v52  ;;  %v701_v57 = vmul.u32.u64.high %v64_v36, %v59_v52, %v700_v56 }
  0x22   :  { %v204_v43 = vsub.f32 %v202_v10, %v203_v40 }
  0x23   :  { %vm73_vm6 = vc.u32 %v698_v55, %v700_v56  ;;  %v74_v59 = vadd.s32 1, %v701_v57  ;;  %v72_v11 = vadd.s32 %v700_v56, %v698_v55 }
  0x24   :  { %v205_v46 = vand.u32 4294901760, %v204_v43 }
  0x25   :  { %v75_v60 = vsel %vm73_vm6, %v74_v59, %v701_v57 }
  0x26   :  { %v76_v61 = vadd.s32 %v75_v60, %v71_v58 }
  0x28   :  { %v77_v62 = vadd.s32 536870912, %v76_v61 }
  0x2a   :  { %v78_v63 = vshrl.u32 %v77_v62, 30 }
  0x2c   :  { %v79_v2 = vshll.u32 %v78_v63, 30  ;;  %v102_v25 = vsub.s32 4, %v78_v63 }
  0x2e   :  { %v80_v4 = vsub.s32 %v76_v61, %v79_v2  ;;  %v103_v28 = vsel %vm18_vm8, %v102_v25, %v78_v63 }
  0x2f   :  { %v105_v29 = vsel %vm17_vm9, 0, %v103_v28 }
  0x30   :  { %v82_v5 = vsub.s32 0, %v80_v4  ;;  %v109_v30 = vand.u32 3, %v105_v29 }
  0x32   :  { %v577_v6 = vmin.u32 %v82_v5, %v80_v4  ;;  %vm114_vm10 = vcmp.eq.s32.totalorder %v109_v30, 2  ;;  %vm111_vm11 = vcmp.eq.s32.totalorder %v109_v30, 0  ;;  %vm110_vm12 = vcmp.lt.s32.totalorder %v109_v30, 2 }
  0x34   :  { %v84_v8 = vclz %v577_v6 }
  0x36   :  { %v578_v9 = vadd.s32 4294967294, %v84_v8 }
  0x38   :  { %vm579_vm7 = vcmp.lt.s32.totalorder %v578_v9, 0 }
  0x39   :  { %v87_v12 = vsel %vm579_vm7, 0, %v578_v9 }
  0x3a   :  { %v88_v13 = vsub.s32 32, %v87_v12  ;;  %v89_v14 = vshll.u32 %v80_v4, %v87_v12  ;;  %v92_v15 = vsub.s32 4294967266, %v87_v12 }
  0x3c   :  { %v90_v16 = vshrl.u32 %v72_v11, %v88_v13  ;;  %v93_v17 = vadd.s32 127, %v92_v15 }
  0x3e   :  { %v91_v18 = vor.u32 %v90_v16, %v89_v14  ;;  %v94_v19 = vshll.u32 %v93_v17, 23 }
  0x40   :  { %v95_v20 = vor.u32 4788187, %v94_v19  ;;  %v98_v21 = vcvt.s32.f32 %v91_v18 }
  0x42   :  { %v96_v22 = vand.u32 2147483647, %v95_v20 }
  0x44   :  { %v99_v23 = vmul.f32 %v98_v21, %v96_v22 }
  0x46   :  { %v100_v24 = vxor.u32 2147483648, %v99_v23 }
  0x48   :  { %v101_v26 = vsel %vm18_vm8, %v100_v24, %v99_v23 }
  0x49   :  { %v104_v27 = vsel %vm17_vm9, %v691_v7, %v101_v26 }
  0x4a   :  { %643 = vcosq.f32 %v104_v27 }
  0x4b   :  { %645 = vsinq.f32 %v104_v27 }
  0x54   :  { %v644_v31 = vpop.eup %643 }
  0x55   :  { %v646_v32 = vpop.eup %645  ;;  %v115_v33 = vxor.u32 2147483648, %v644_v31 }
  0x56   :  { %v112_v34 = vxor.u32 2147483648, %v646_v32 }
  0x57   :  { %v116_v35 = vsel %vm114_vm10, %v115_v33, %v646_v32 }
  0x58   :  { %v113_v36 = vsel %vm111_vm11, %v644_v31, %v112_v34 }
  0x59   :  { %v117_v37 = vsel %vm110_vm12, %v113_v36, %v116_v35 }
  0x5a   :  { %v118_v38 = vsel %vm108_vm13, nan, %v117_v37 }
  0x5b   :  { %v122_v39 = vsel %vm120_vm14, %v118_v38, 0 }
  0x5c   :  { %v190_v41 = vand.u32 4294901760, %v122_v39 }
  0x5e   :  { %v191_v42 = vsub.f32 %v122_v39, %v190_v41 }
  0x60   :  { %v192_v44 = vand.u32 4294901760, %v191_v42 }
  0x62   :  { %610 = vmatmul.mubr.f32.vlgmr.msra.gmra.mrb[0].mxu0 %v192_v44  ;;  %v193_v45 = vsub.f32 %v191_v42, %v192_v44 }
  0x63   :  { %613 = vmatpush3.msra.mxu0 %v203_v40  ;;  %614 = vmatprep.mubr.msk.f32.mxu0 %vm648_vm0, %v647_v0 }
  0x64   :  { %v194_v1 = vand.u32 4294901760, %v193_v45  ;;  %617 = vmatprep.subr.mxu0 %v647_v0 }
  0x66   :  { %595 = vmatmul.mubr.f32.vlgmr.msra.gmra.mrb[0].mxu1 %v194_v1 }
  0x67   :  { %598 = vmatpush3.msra.mxu1 %v205_v46  ;;  %599 = vmatprep.mubr.msk.f32.mxu1 %vm648_vm0, %v647_v0 }
  0x68   :  { %602 = vmatprep.subr.mxu1 %v647_v0 }
  0x6a   :  { %615 = vmatmul.mubr.f32.vlgmr.msra.gmra.mrb[0].mxu0 %v190_v41 }
  0x6b   :  { %618 = vmatpush3.msra.mxu0 %v682_v3  ;;  %619 = vmatprep.mubr.msk.f32.mxu0 %vm648_vm0, %v647_v0 }
  0x6e   :  { %600 = vmatmul.mubr.f32.vlgmr.msra.gmra.mrb[0].mxu1 %v190_v41 }
  0x6f   :  { %603 = vmatpush3.msra.mxu1 %v202_v10  ;;  %604 = vmatprep.mubr.msk.f32.mxu1 %vm648_vm0, %v647_v0 }
  0x72   :  { %620 = vmatmul.mubr.f32.vlgmr.msra.gmra.mrb[0].mxu0 %v190_v41 }
  0x76   :  { %605 = vmatmul.mubr.f32.vlgmr.msra.gmra.mrb[0].mxu1 %v191_v42 }
 0x145   :  { %v566_v7 = vpop.f32.mrb[0].mxu0 }
 0x146   :  { %v621_v47 = vpop.f32.mrb[1].mxu0 }
 0x149   :  { %v346_v48 = vpop.f32.mrb[0].mxu1 }
 0x14a   :  { %v622_v49 = vadd.f32 %v566_v7, %v346_v48  ;;  %v606_v50 = vpop.f32.mrb[1].mxu1 }
 0x14c   :  { %571 = vst.msk [vmem:[%s730_s2] sm:$0xff] %vm570_vm15, %v622_v49 }

</bundles_post_ra>
